<compile_context>
chip_gen: v7x
topology: tpu7x:2x2x1
jax: 0.10.0
libtpu: 0.0.40
codegen_flags: <defaults>
</compile_context>

<pallas_src>
import functools

import jax
import jax.numpy as jnp
from jax.experimental import pallas as pl
from jax.experimental.pallas import tpu as pltpu

EPS = 1e-5


# ----------------------------- kernel helpers ------------------------------ #

def _shift_time(x2d, steps, r):
    """Causally shift a (C, T*R) value `steps` time-steps to the right.

    Flat index is t*R + r, so shifting by `steps` time-steps is a shift of
    steps*R elements along the lane axis; the first steps*R positions become
    the causal zero padding.
    """
    if steps == 0:
        return x2d
    c, tr = x2d.shape
    s = steps * r
    zeros = jnp.zeros((c, s), x2d.dtype)
    return jnp.concatenate([zeros, x2d[:, :tr - s]], axis=1)


def _conv_bn_relu(x2d, w2, gamma, beta, *, ks, dil, r):
    """Fused causal dilated conv + train-mode BatchNorm2d + ReLU (all in VMEM).

    x2d   : (Cin, T*R)       activations, T*R on lanes
    w2    : (Cout, ks*Cin)   conv weight, rows ordered (k major, cin minor)
    gamma : (Cout, 1)        BN weight
    beta  : (Cout, 1)        BN bias
    Note: the conv bias is intentionally omitted -- train-mode BN subtracts the
    per-channel batch mean right after the conv, which cancels it exactly.
    """
    cin, tr = x2d.shape
    cout = w2.shape[0]

    if cin % 8 == 0:
        # im2col: stack the ks causally-shifted copies on sublanes so the whole
        # conv is ONE matmul with contraction dim ks*Cin (better MXU fill).
        cols = [_shift_time(x2d, (ks - 1 - k) * dil, r) for k in range(ks)]
        im2col = jnp.concatenate(cols, axis=0) if ks > 1 else cols[0]
        y = jnp.dot(w2, im2col, preferred_element_type=jnp.float32)   # (Cout, T*R)
    else:
        # Sublane-unaligned channel count: per-tap matmuls (still a single pass
        # over x resident in VMEM; no extra HBM traffic).
        y = jnp.zeros((cout, tr), jnp.float32)
        for k in range(ks):
            xs = _shift_time(x2d, (ks - 1 - k) * dil, r)
            wk = w2[:, k * cin:(k + 1) * cin]
            y = y + jnp.dot(wk, xs, preferred_element_type=jnp.float32)

    # BatchNorm2d (train mode): per-channel stats over every (n, h, w) position,
    # i.e. over the whole lane axis.  One pass: sum + sum-of-squares.
    inv_n = 1.0 / tr
    s1 = jnp.sum(y, axis=1, keepdims=True)                     # (Cout, 1)
    s2 = jnp.sum(y * y, axis=1, keepdims=True)                 # (Cout, 1)
    mean = s1 * inv_n
    var = s2 * inv_n - mean * mean                             # biased variance
    scale = gamma * jax.lax.rsqrt(var + EPS)
    shift = beta - mean * scale
    return jnp.maximum(y * scale + shift, 0.0)


# ----------------------------- fused block kernel --------------------------- #

def tcn_block_kernel(x_ref, wa_ref, ga_ref, ba_ref, wb_ref, gb_ref, bb_ref,
                     wd_ref, bd_ref, o_ref, *, ks, dil, r, relu_out, has_ds):
    """One full residual block in a single kernel; intermediates stay in VMEM.

      h   = ReLU(BN(conv_a(x)));  h = ReLU(BN(conv_b(h)))
      res = 1x1 conv(x) + bias    (or x itself if no downsample)
      out = h + res               (ReLU'd for block 1, plain add for block 2)
    """
    x = x_ref[...]                                             # (Cin, T*R)
    h = _conv_bn_relu(x, wa_ref[...], ga_ref[...], ba_ref[...],
                      ks=ks, dil=dil, r=r)
    h = _conv_bn_relu(h, wb_ref[...], gb_ref[...], bb_ref[...],
                      ks=ks, dil=dil, r=r)
    if has_ds:
        res = jnp.dot(wd_ref[...], x,
                      preferred_element_type=jnp.float32) + bd_ref[...]
    else:
        res = x                                                # Cin == Cout here
    out = h + res
    if relu_out:
        out = jnp.maximum(out, 0.0)
    o_ref[...] = out


def tcn_block(x2d, wa, ga, ba, wb, gb, bb, wd, bd, *, ks, dil, r, relu_out):
    cout, tr = wb.shape[0], x2d.shape[1]
    has_ds = wd is not None
    if not has_ds:                    # dummy (unused) refs keep the arity fixed
        wd = jnp.zeros((1, 1), jnp.float32)
        bd = jnp.zeros((1, 1), jnp.float32)
    kernel = functools.partial(tcn_block_kernel, ks=ks, dil=dil, r=r,
                               relu_out=relu_out, has_ds=has_ds)
    # NOTE: whole-array VMEM residency (no grid) -- ideal at these activation
    # sizes (everything is a few KiB).  For large N*H*W this would need an
    # R-axis grid with a two-pass (stats, then normalize) BN structure.
    return pl.pallas_call(
        kernel,
        out_shape=jax.ShapeDtypeStruct((cout, tr), jnp.float32),
        in_specs=[pl.BlockSpec(memory_space=pltpu.MemorySpace.VMEM)
                  for _ in range(9)],
        out_specs=pl.BlockSpec(memory_space=pltpu.MemorySpace.VMEM),
    )(x2d, wa, ga, ba, wb, gb, bb, wd, bd)


# ----------------------------- TCN module ---------------------------------- #

def init_tcn_params(key, c_in, c0, c1, ks):
    """Deterministic synthetic init (shapes / fan-in match the PyTorch module).

    Conv biases of the BN-followed convs are not created: train-mode BatchNorm
    subtracts the batch mean immediately after the conv, so a per-channel bias
    can never affect the forward output.
    """
    keys = jax.random.split(key, 8)

    def conv_w(k, kk, ci, co):
        s = 1.0 / jnp.sqrt(ci * kk)
        # stored as (ks, Cin, Cout) == transpose of PyTorch (Cout, Cin, 1, ks)
        return jax.random.uniform(k, (kk, ci, co), jnp.float32, -s, s)

    def conv_b(k, ci, kk, co):
        s = 1.0 / jnp.sqrt(ci * kk)
        return jax.random.uniform(k, (co, 1), jnp.float32, -s, s)

    p = {
        # conv_block1 (dilation 1)
        "c1a_w": conv_w(keys[0], ks, c_in, c0),
        "bn1a_g": jnp.ones((c0, 1), jnp.float32),
        "bn1a_b": jnp.zeros((c0, 1), jnp.float32),
        "c1b_w": conv_w(keys[1], ks, c0, c0),
        "bn1b_g": jnp.ones((c0, 1), jnp.float32),
        "bn1b_b": jnp.zeros((c0, 1), jnp.float32),
        # conv_block2 (dilation 2)
        "c2a_w": conv_w(keys[2], ks, c0, c1),
        "bn2a_g": jnp.ones((c1, 1), jnp.float32),
        "bn2a_b": jnp.zeros((c1, 1), jnp.float32),
        "c2b_w": conv_w(keys[3], ks, c1, c1),
        "bn2b_g": jnp.ones((c1, 1), jnp.float32),
        "bn2b_b": jnp.zeros((c1, 1), jnp.float32),
    }
    if c_in != c0:   # downsample0 (1x1 conv, keeps its bias -- no BN after it)
        p["ds0_w"] = jnp.transpose(conv_w(keys[4], 1, c_in, c0)[0])   # (c0, c_in)
        p["ds0_b"] = conv_b(keys[5], c_in, 1, c0)                     # (c0, 1)
    if c0 != c1:     # downsample1
        p["ds1_w"] = jnp.transpose(conv_w(keys[6], 1, c0, c1)[0])     # (c1, c0)
        p["ds1_b"] = conv_b(keys[7], c0, 1, c1)
    return p


def _w2d(w3):
    """(ks, Cin, Cout) -> (Cout, ks*Cin), rows ordered (k major, cin minor)."""
    kk, ci, co = w3.shape
    return jnp.transpose(w3.reshape(kk * ci, co))


def tcn_forward(x_nchw, p):
    N, C, H, W = x_nchw.shape
    R = N * H
    ks = p["c1a_w"].shape[0]

    # NCHW -> (C, T*R): channels on sublanes, time*rows on lanes (lane-dense).
    x2d = jnp.transpose(x_nchw, (1, 3, 0, 2)).reshape(C, W * R)

    # Residual block 1 (dilation 1): out0 = ReLU(conv_block1(x) + downsample0(x))
    out0 = tcn_block(
        x2d, _w2d(p["c1a_w"]), p["bn1a_g"], p["bn1a_b"],
        _w2d(p["c1b_w"]), p["bn1b_g"], p["bn1b_b"],
        p.get("ds0_w"), p.get("ds0_b"),
        ks=ks, dil=1, r=R, relu_out=True)

    # Residual block 2 (dilation 2): out = conv_block2(out0) + downsample1(out0)
    out = tcn_block(
        out0, _w2d(p["c2a_w"]), p["bn2a_g"], p["bn2a_b"],
        _w2d(p["c2b_w"]), p["bn2b_g"], p["bn2b_b"],
        p.get("ds1_w"), p.get("ds1_b"),
        ks=ks, dil=2, r=R, relu_out=False)

    C1 = out.shape[0]
    # (C1, T*R) -> NCHW
    return jnp.transpose(out.reshape(C1, W, N, H), (2, 0, 3, 1))


if __name__ == "__main__":
    # config: capacity=4, tcn_layers=[8], out_capacity=16, ks=3
    N, C_IN, H, W = 2, 4, 8, 16
    C0, C1, KS = 8, 16, 3

    key = jax.random.PRNGKey(0)
    k_x, k_p = jax.random.split(key)
    x = jax.random.normal(k_x, (N, C_IN, H, W), jnp.float32)
    params = init_tcn_params(k_p, C_IN, C0, C1, KS)

    out = jax.jit(tcn_forward)(x, params)
    out = jax.block_until_ready(out)
    assert out.shape == (N, C1, H, W), out.shape
    print("KERNEL_OK")
</pallas_src>

<mosaic_0001>
module attributes {stable_mosaic.version = 11 : i64} {
  func.func @tcn_block_kernel(%arg0: memref<8x256xf32, #tpu.memory_space<vmem>>, %arg1: memref<16x24xf32, #tpu.memory_space<vmem>>, %arg2: memref<16x1xf32, #tpu.memory_space<vmem>>, %arg3: memref<16x1xf32, #tpu.memory_space<vmem>>, %arg4: memref<16x48xf32, #tpu.memory_space<vmem>>, %arg5: memref<16x1xf32, #tpu.memory_space<vmem>>, %arg6: memref<16x1xf32, #tpu.memory_space<vmem>>, %arg7: memref<16x8xf32, #tpu.memory_space<vmem>>, %arg8: memref<16x1xf32, #tpu.memory_space<vmem>>, %arg9: memref<16x256xf32, #tpu.memory_space<vmem>>) attributes {dimension_semantics = [], scalar_prefetch = 0 : i64, scratch_operands = 0 : i64, tpu.core_type = #tpu.core_type<tc>} {
    %c0 = arith.constant 0 : index
    %c0_0 = arith.constant 0 : index
    %0 = vector.load %arg0[%c0, %c0_0] : memref<8x256xf32, #tpu.memory_space<vmem>>, vector<8x256xf32>
    %c0_1 = arith.constant 0 : index
    %c0_2 = arith.constant 0 : index
    %1 = vector.load %arg1[%c0_1, %c0_2] : memref<16x24xf32, #tpu.memory_space<vmem>>, vector<16x24xf32>
    %c0_3 = arith.constant 0 : index
    %c0_4 = arith.constant 0 : index
    %2 = vector.load %arg2[%c0_3, %c0_4] : memref<16x1xf32, #tpu.memory_space<vmem>>, vector<16x1xf32>
    %c0_5 = arith.constant 0 : index
    %c0_6 = arith.constant 0 : index
    %3 = vector.load %arg3[%c0_5, %c0_6] : memref<16x1xf32, #tpu.memory_space<vmem>>, vector<16x1xf32>
    %cst = arith.constant 0.000000e+00 : f32
    %4 = vector.broadcast %cst : f32 to vector<8x64xf32>
    %5 = vector.extract_strided_slice %0 {offsets = [0, 0], sizes = [8, 192], strides = [1, 1]} : vector<8x256xf32> to vector<8x192xf32>
    %6 = tpu.concatenate %4, %5 in 1 : vector<8x64xf32>, vector<8x192xf32> -> vector<8x256xf32>
    %cst_7 = arith.constant 0.000000e+00 : f32
    %7 = vector.broadcast %cst_7 : f32 to vector<8x32xf32>
    %8 = vector.extract_strided_slice %0 {offsets = [0, 0], sizes = [8, 224], strides = [1, 1]} : vector<8x256xf32> to vector<8x224xf32>
    %9 = tpu.concatenate %7, %8 in 1 : vector<8x32xf32>, vector<8x224xf32> -> vector<8x256xf32>
    %10 = tpu.concatenate %6, %9, %0 in 0 : vector<8x256xf32>, vector<8x256xf32>, vector<8x256xf32> -> vector<24x256xf32>
    %cst_8 = arith.constant dense<0.000000e+00> : vector<16x256xf32>
    %11 = tpu.matmul %1, %10, %cst_8 {dimension_numbers = #tpu.dot_dimension_numbers<[1], [0], [0], [1], [0, 0, 1, 1], [], []>} : vector<16x24xf32>, vector<24x256xf32>, vector<16x256xf32> -> vector<16x256xf32>
    %cst_9 = arith.constant dense<0.000000e+00> : vector<16xf32>
    %12 = vector.multi_reduction <add>, %11, %cst_9 [1] : vector<16x256xf32> to vector<16xf32>
    %13 = vector.shape_cast %12 : vector<16xf32> to vector<16x1xf32>
    %14 = arith.mulf %11, %11 : vector<16x256xf32>
    %cst_10 = arith.constant dense<0.000000e+00> : vector<16xf32>
    %15 = vector.multi_reduction <add>, %14, %cst_10 [1] : vector<16x256xf32> to vector<16xf32>
    %16 = vector.shape_cast %15 : vector<16xf32> to vector<16x1xf32>
    %cst_11 = arith.constant 3.906250e-03 : f32
    %17 = vector.broadcast %cst_11 : f32 to vector<16x1xf32>
    %18 = arith.mulf %13, %17 : vector<16x1xf32>
    %cst_12 = arith.constant 3.906250e-03 : f32
    %19 = vector.broadcast %cst_12 : f32 to vector<16x1xf32>
    %20 = arith.mulf %16, %19 : vector<16x1xf32>
    %21 = arith.mulf %18, %18 : vector<16x1xf32>
    %22 = arith.subf %20, %21 : vector<16x1xf32>
    %cst_13 = arith.constant 9.99999974E-6 : f32
    %23 = vector.broadcast %cst_13 : f32 to vector<16x1xf32>
    %24 = arith.addf %22, %23 : vector<16x1xf32>
    %25 = math.rsqrt %24 : vector<16x1xf32>
    %26 = arith.mulf %2, %25 : vector<16x1xf32>
    %27 = arith.mulf %18, %26 : vector<16x1xf32>
    %28 = arith.subf %3, %27 : vector<16x1xf32>
    %29 = vector.broadcast %26 : vector<16x1xf32> to vector<16x256xf32>
    %30 = arith.mulf %11, %29 : vector<16x256xf32>
    %31 = vector.broadcast %28 : vector<16x1xf32> to vector<16x256xf32>
    %32 = arith.addf %30, %31 : vector<16x256xf32>
    %cst_14 = arith.constant 0.000000e+00 : f32
    %33 = vector.broadcast %cst_14 : f32 to vector<16x256xf32>
    %34 = arith.maximumf %32, %33 : vector<16x256xf32>
    %c0_15 = arith.constant 0 : index
    %c0_16 = arith.constant 0 : index
    %35 = vector.load %arg4[%c0_15, %c0_16] : memref<16x48xf32, #tpu.memory_space<vmem>>, vector<16x48xf32>
    %c0_17 = arith.constant 0 : index
    %c0_18 = arith.constant 0 : index
    %36 = vector.load %arg5[%c0_17, %c0_18] : memref<16x1xf32, #tpu.memory_space<vmem>>, vector<16x1xf32>
    %c0_19 = arith.constant 0 : index
    %c0_20 = arith.constant 0 : index
    %37 = vector.load %arg6[%c0_19, %c0_20] : memref<16x1xf32, #tpu.memory_space<vmem>>, vector<16x1xf32>
    %cst_21 = arith.constant 0.000000e+00 : f32
    %38 = vector.broadcast %cst_21 : f32 to vector<16x64xf32>
    %39 = vector.extract_strided_slice %34 {offsets = [0, 0], sizes = [16, 192], strides = [1, 1]} : vector<16x256xf32> to vector<16x192xf32>
    %40 = tpu.concatenate %38, %39 in 1 : vector<16x64xf32>, vector<16x192xf32> -> vector<16x256xf32>
    %cst_22 = arith.constant 0.000000e+00 : f32
    %41 = vector.broadcast %cst_22 : f32 to vector<16x32xf32>
    %42 = vector.extract_strided_slice %34 {offsets = [0, 0], sizes = [16, 224], strides = [1, 1]} : vector<16x256xf32> to vector<16x224xf32>
    %43 = tpu.concatenate %41, %42 in 1 : vector<16x32xf32>, vector<16x224xf32> -> vector<16x256xf32>
    %44 = tpu.concatenate %40, %43, %34 in 0 : vector<16x256xf32>, vector<16x256xf32>, vector<16x256xf32> -> vector<48x256xf32>
    %cst_23 = arith.constant dense<0.000000e+00> : vector<16x256xf32>
    %45 = tpu.matmul %35, %44, %cst_23 {dimension_numbers = #tpu.dot_dimension_numbers<[1], [0], [0], [1], [0, 0, 1, 1], [], []>} : vector<16x48xf32>, vector<48x256xf32>, vector<16x256xf32> -> vector<16x256xf32>
    %cst_24 = arith.constant dense<0.000000e+00> : vector<16xf32>
    %46 = vector.multi_reduction <add>, %45, %cst_24 [1] : vector<16x256xf32> to vector<16xf32>
    %47 = vector.shape_cast %46 : vector<16xf32> to vector<16x1xf32>
    %48 = arith.mulf %45, %45 : vector<16x256xf32>
    %cst_25 = arith.constant dense<0.000000e+00> : vector<16xf32>
    %49 = vector.multi_reduction <add>, %48, %cst_25 [1] : vector<16x256xf32> to vector<16xf32>
    %50 = vector.shape_cast %49 : vector<16xf32> to vector<16x1xf32>
    %cst_26 = arith.constant 3.906250e-03 : f32
    %51 = vector.broadcast %cst_26 : f32 to vector<16x1xf32>
    %52 = arith.mulf %47, %51 : vector<16x1xf32>
    %cst_27 = arith.constant 3.906250e-03 : f32
    %53 = vector.broadcast %cst_27 : f32 to vector<16x1xf32>
    %54 = arith.mulf %50, %53 : vector<16x1xf32>
    %55 = arith.mulf %52, %52 : vector<16x1xf32>
    %56 = arith.subf %54, %55 : vector<16x1xf32>
    %cst_28 = arith.constant 9.99999974E-6 : f32
    %57 = vector.broadcast %cst_28 : f32 to vector<16x1xf32>
    %58 = arith.addf %56, %57 : vector<16x1xf32>
    %59 = math.rsqrt %58 : vector<16x1xf32>
    %60 = arith.mulf %36, %59 : vector<16x1xf32>
    %61 = arith.mulf %52, %60 : vector<16x1xf32>
    %62 = arith.subf %37, %61 : vector<16x1xf32>
    %63 = vector.broadcast %60 : vector<16x1xf32> to vector<16x256xf32>
    %64 = arith.mulf %45, %63 : vector<16x256xf32>
    %65 = vector.broadcast %62 : vector<16x1xf32> to vector<16x256xf32>
    %66 = arith.addf %64, %65 : vector<16x256xf32>
    %cst_29 = arith.constant 0.000000e+00 : f32
    %67 = vector.broadcast %cst_29 : f32 to vector<16x256xf32>
    %68 = arith.maximumf %66, %67 : vector<16x256xf32>
    %c0_30 = arith.constant 0 : index
    %c0_31 = arith.constant 0 : index
    %69 = vector.load %arg7[%c0_30, %c0_31] : memref<16x8xf32, #tpu.memory_space<vmem>>, vector<16x8xf32>
    %cst_32 = arith.constant dense<0.000000e+00> : vector<16x256xf32>
    %70 = tpu.matmul %69, %0, %cst_32 {dimension_numbers = #tpu.dot_dimension_numbers<[1], [0], [0], [1], [0, 0, 1, 1], [], []>} : vector<16x8xf32>, vector<8x256xf32>, vector<16x256xf32> -> vector<16x256xf32>
    %c0_33 = arith.constant 0 : index
    %c0_34 = arith.constant 0 : index
    %71 = vector.load %arg8[%c0_33, %c0_34] : memref<16x1xf32, #tpu.memory_space<vmem>>, vector<16x1xf32>
    %72 = vector.broadcast %71 : vector<16x1xf32> to vector<16x256xf32>
    %73 = arith.addf %70, %72 : vector<16x256xf32>
    %74 = arith.addf %68, %73 : vector<16x256xf32>
    %c0_35 = arith.constant 0 : index
    %c0_36 = arith.constant 0 : index
    %75 = vector.load %arg9[%c0_35, %c0_36] : memref<16x256xf32, #tpu.memory_space<vmem>>, vector<16x256xf32>
    tpu.vector_store %arg9[%c0_35, %c0_36], %74 {strides = array<i32>} : memref<16x256xf32, #tpu.memory_space<vmem>>, vector<16x256xf32>,
    return
  }
}

module attributes {stable_mosaic.version = 11 : i64} {
  func.func @tcn_block_kernel(%arg0: memref<4x256xf32, #tpu.memory_space<vmem>>, %arg1: memref<8x12xf32, #tpu.memory_space<vmem>>, %arg2: memref<8x1xf32, #tpu.memory_space<vmem>>, %arg3: memref<8x1xf32, #tpu.memory_space<vmem>>, %arg4: memref<8x24xf32, #tpu.memory_space<vmem>>, %arg5: memref<8x1xf32, #tpu.memory_space<vmem>>, %arg6: memref<8x1xf32, #tpu.memory_space<vmem>>, %arg7: memref<8x4xf32, #tpu.memory_space<vmem>>, %arg8: memref<8x1xf32, #tpu.memory_space<vmem>>, %arg9: memref<8x256xf32, #tpu.memory_space<vmem>>) attributes {dimension_semantics = [], scalar_prefetch = 0 : i64, scratch_operands = 0 : i64, tpu.core_type = #tpu.core_type<tc>} {
    %c0 = arith.constant 0 : index
    %c0_0 = arith.constant 0 : index
    %0 = vector.load %arg0[%c0, %c0_0] : memref<4x256xf32, #tpu.memory_space<vmem>>, vector<4x256xf32>
    %c0_1 = arith.constant 0 : index
    %c0_2 = arith.constant 0 : index
    %1 = vector.load %arg1[%c0_1, %c0_2] : memref<8x12xf32, #tpu.memory_space<vmem>>, vector<8x12xf32>
    %c0_3 = arith.constant 0 : index
    %c0_4 = arith.constant 0 : index
    %2 = vector.load %arg2[%c0_3, %c0_4] : memref<8x1xf32, #tpu.memory_space<vmem>>, vector<8x1xf32>
    %c0_5 = arith.constant 0 : index
    %c0_6 = arith.constant 0 : index
    %3 = vector.load %arg3[%c0_5, %c0_6] : memref<8x1xf32, #tpu.memory_space<vmem>>, vector<8x1xf32>
    %cst = arith.constant 0.000000e+00 : f32
    %4 = vector.broadcast %cst : f32 to vector<8x256xf32>
    %cst_7 = arith.constant 0.000000e+00 : f32
    %5 = vector.broadcast %cst_7 : f32 to vector<4x32xf32>
    %6 = vector.extract_strided_slice %0 {offsets = [0, 0], sizes = [4, 224], strides = [1, 1]} : vector<4x256xf32> to vector<4x224xf32>
    %7 = tpu.concatenate %5, %6 in 1 : vector<4x32xf32>, vector<4x224xf32> -> vector<4x256xf32>
    %8 = vector.extract_strided_slice %1 {offsets = [0, 0], sizes = [8, 4], strides = [1, 1]} : vector<8x12xf32> to vector<8x4xf32>
    %cst_8 = arith.constant dense<0.000000e+00> : vector<8x256xf32>
    %9 = tpu.matmul %8, %7, %cst_8 {dimension_numbers = #tpu.dot_dimension_numbers<[1], [0], [0], [1], [0, 0, 1, 1], [], []>} : vector<8x4xf32>, vector<4x256xf32>, vector<8x256xf32> -> vector<8x256xf32>
    %10 = arith.addf %4, %9 : vector<8x256xf32>
    %cst_9 = arith.constant 0.000000e+00 : f32
    %11 = vector.broadcast %cst_9 : f32 to vector<4x16xf32>
    %12 = vector.extract_strided_slice %0 {offsets = [0, 0], sizes = [4, 240], strides = [1, 1]} : vector<4x256xf32> to vector<4x240xf32>
    %13 = tpu.concatenate %11, %12 in 1 : vector<4x16xf32>, vector<4x240xf32> -> vector<4x256xf32>
    %14 = vector.extract_strided_slice %1 {offsets = [0, 4], sizes = [8, 4], strides = [1, 1]} : vector<8x12xf32> to vector<8x4xf32>
    %cst_10 = arith.constant dense<0.000000e+00> : vector<8x256xf32>
    %15 = tpu.matmul %14, %13, %cst_10 {dimension_numbers = #tpu.dot_dimension_numbers<[1], [0], [0], [1], [0, 0, 1, 1], [], []>} : vector<8x4xf32>, vector<4x256xf32>, vector<8x256xf32> -> vector<8x256xf32>
    %16 = arith.addf %10, %15 : vector<8x256xf32>
    %17 = vector.extract_strided_slice %1 {offsets = [0, 8], sizes = [8, 4], strides = [1, 1]} : vector<8x12xf32> to vector<8x4xf32>
    %cst_11 = arith.constant dense<0.000000e+00> : vector<8x256xf32>
    %18 = tpu.matmul %17, %0, %cst_11 {dimension_numbers = #tpu.dot_dimension_numbers<[1], [0], [0], [1], [0, 0, 1, 1], [], []>} : vector<8x4xf32>, vector<4x256xf32>, vector<8x256xf32> -> vector<8x256xf32>
    %19 = arith.addf %16, %18 : vector<8x256xf32>
    %cst_12 = arith.constant dense<0.000000e+00> : vector<8xf32>
    %20 = vector.multi_reduction <add>, %19, %cst_12 [1] : vector<8x256xf32> to vector<8xf32>
    %21 = vector.shape_cast %20 : vector<8xf32> to vector<8x1xf32>
    %22 = arith.mulf %19, %19 : vector<8x256xf32>
    %cst_13 = arith.constant dense<0.000000e+00> : vector<8xf32>
    %23 = vector.multi_reduction <add>, %22, %cst_13 [1] : vector<8x256xf32> to vector<8xf32>
    %24 = vector.shape_cast %23 : vector<8xf32> to vector<8x1xf32>
    %cst_14 = arith.constant 3.906250e-03 : f32
    %25 = vector.broadcast %cst_14 : f32 to vector<8x1xf32>
    %26 = arith.mulf %21, %25 : vector<8x1xf32>
    %cst_15 = arith.constant 3.906250e-03 : f32
    %27 = vector.broadcast %cst_15 : f32 to vector<8x1xf32>
    %28 = arith.mulf %24, %27 : vector<8x1xf32>
    %29 = arith.mulf %26, %26 : vector<8x1xf32>
    %30 = arith.subf %28, %29 : vector<8x1xf32>
    %cst_16 = arith.constant 9.99999974E-6 : f32
    %31 = vector.broadcast %cst_16 : f32 to vector<8x1xf32>
    %32 = arith.addf %30, %31 : vector<8x1xf32>
    %33 = math.rsqrt %32 : vector<8x1xf32>
    %34 = arith.mulf %2, %33 : vector<8x1xf32>
    %35 = arith.mulf %26, %34 : vector<8x1xf32>
    %36 = arith.subf %3, %35 : vector<8x1xf32>
    %37 = vector.broadcast %34 : vector<8x1xf32> to vector<8x256xf32>
    %38 = arith.mulf %19, %37 : vector<8x256xf32>
    %39 = vector.broadcast %36 : vector<8x1xf32> to vector<8x256xf32>
    %40 = arith.addf %38, %39 : vector<8x256xf32>
    %cst_17 = arith.constant 0.000000e+00 : f32
    %41 = vector.broadcast %cst_17 : f32 to vector<8x256xf32>
    %42 = arith.maximumf %40, %41 : vector<8x256xf32>
    %c0_18 = arith.constant 0 : index
    %c0_19 = arith.constant 0 : index
    %43 = vector.load %arg4[%c0_18, %c0_19] : memref<8x24xf32, #tpu.memory_space<vmem>>, vector<8x24xf32>
    %c0_20 = arith.constant 0 : index
    %c0_21 = arith.constant 0 : index
    %44 = vector.load %arg5[%c0_20, %c0_21] : memref<8x1xf32, #tpu.memory_space<vmem>>, vector<8x1xf32>
    %c0_22 = arith.constant 0 : index
    %c0_23 = arith.constant 0 : index
    %45 = vector.load %arg6[%c0_22, %c0_23] : memref<8x1xf32, #tpu.memory_space<vmem>>, vector<8x1xf32>
    %cst_24 = arith.constant 0.000000e+00 : f32
    %46 = vector.broadcast %cst_24 : f32 to vector<8x32xf32>
    %47 = vector.extract_strided_slice %42 {offsets = [0, 0], sizes = [8, 224], strides = [1, 1]} : vector<8x256xf32> to vector<8x224xf32>
    %48 = tpu.concatenate %46, %47 in 1 : vector<8x32xf32>, vector<8x224xf32> -> vector<8x256xf32>
    %cst_25 = arith.constant 0.000000e+00 : f32
    %49 = vector.broadcast %cst_25 : f32 to vector<8x16xf32>
    %50 = vector.extract_strided_slice %42 {offsets = [0, 0], sizes = [8, 240], strides = [1, 1]} : vector<8x256xf32> to vector<8x240xf32>
    %51 = tpu.concatenate %49, %50 in 1 : vector<8x16xf32>, vector<8x240xf32> -> vector<8x256xf32>
    %52 = tpu.concatenate %48, %51, %42 in 0 : vector<8x256xf32>, vector<8x256xf32>, vector<8x256xf32> -> vector<24x256xf32>
    %cst_26 = arith.constant dense<0.000000e+00> : vector<8x256xf32>
    %53 = tpu.matmul %43, %52, %cst_26 {dimension_numbers = #tpu.dot_dimension_numbers<[1], [0], [0], [1], [0, 0, 1, 1], [], []>} : vector<8x24xf32>, vector<24x256xf32>, vector<8x256xf32> -> vector<8x256xf32>
    %cst_27 = arith.constant dense<0.000000e+00> : vector<8xf32>
    %54 = vector.multi_reduction <add>, %53, %cst_27 [1] : vector<8x256xf32> to vector<8xf32>
    %55 = vector.shape_cast %54 : vector<8xf32> to vector<8x1xf32>
    %56 = arith.mulf %53, %53 : vector<8x256xf32>
    %cst_28 = arith.constant dense<0.000000e+00> : vector<8xf32>
    %57 = vector.multi_reduction <add>, %56, %cst_28 [1] : vector<8x256xf32> to vector<8xf32>
    %58 = vector.shape_cast %57 : vector<8xf32> to vector<8x1xf32>
    %cst_29 = arith.constant 3.906250e-03 : f32
    %59 = vector.broadcast %cst_29 : f32 to vector<8x1xf32>
    %60 = arith.mulf %55, %59 : vector<8x1xf32>
    %cst_30 = arith.constant 3.906250e-03 : f32
    %61 = vector.broadcast %cst_30 : f32 to vector<8x1xf32>
    %62 = arith.mulf %58, %61 : vector<8x1xf32>
    %63 = arith.mulf %60, %60 : vector<8x1xf32>
    %64 = arith.subf %62, %63 : vector<8x1xf32>
    %cst_31 = arith.constant 9.99999974E-6 : f32
    %65 = vector.broadcast %cst_31 : f32 to vector<8x1xf32>
    %66 = arith.addf %64, %65 : vector<8x1xf32>
    %67 = math.rsqrt %66 : vector<8x1xf32>
    %68 = arith.mulf %44, %67 : vector<8x1xf32>
    %69 = arith.mulf %60, %68 : vector<8x1xf32>
    %70 = arith.subf %45, %69 : vector<8x1xf32>
    %71 = vector.broadcast %68 : vector<8x1xf32> to vector<8x256xf32>
    %72 = arith.mulf %53, %71 : vector<8x256xf32>
    %73 = vector.broadcast %70 : vector<8x1xf32> to vector<8x256xf32>
    %74 = arith.addf %72, %73 : vector<8x256xf32>
    %cst_32 = arith.constant 0.000000e+00 : f32
    %75 = vector.broadcast %cst_32 : f32 to vector<8x256xf32>
    %76 = arith.maximumf %74, %75 : vector<8x256xf32>
    %c0_33 = arith.constant 0 : index
    %c0_34 = arith.constant 0 : index
    %77 = vector.load %arg7[%c0_33, %c0_34] : memref<8x4xf32, #tpu.memory_space<vmem>>, vector<8x4xf32>
    %cst_35 = arith.constant dense<0.000000e+00> : vector<8x256xf32>
    %78 = tpu.matmul %77, %0, %cst_35 {dimension_numbers = #tpu.dot_dimension_numbers<[1], [0], [0], [1], [0, 0, 1, 1], [], []>} : vector<8x4xf32>, vector<4x256xf32>, vector<8x256xf32> -> vector<8x256xf32>
    %c0_36 = arith.constant 0 : index
    %c0_37 = arith.constant 0 : index
    %79 = vector.load %arg8[%c0_36, %c0_37] : memref<8x1xf32, #tpu.memory_space<vmem>>, vector<8x1xf32>
    %80 = vector.broadcast %79 : vector<8x1xf32> to vector<8x256xf32>
    %81 = arith.addf %78, %80 : vector<8x256xf32>
    %82 = arith.addf %76, %81 : vector<8x256xf32>
    %cst_38 = arith.constant 0.000000e+00 : f32
    %83 = vector.broadcast %cst_38 : f32 to vector<8x256xf32>
    %84 = arith.maximumf %82, %83 : vector<8x256xf32>
    %c0_39 = arith.constant 0 : index
    %c0_40 = arith.constant 0 : index
    %85 = vector.load %arg9[%c0_39, %c0_40] : memref<8x256xf32, #tpu.memory_space<vmem>>, vector<8x256xf32>
    tpu.vector_store %arg9[%c0_39, %c0_40], %84 {strides = array<i32>} : memref<8x256xf32, #tpu.memory_space<vmem>>, vector<8x256xf32>,
    return
  }
}

</mosaic_0001>

<bundles_post_ra>
// kernel: tcn_forward.3
= control target key start
LH: loop header
LB: loop body
LE: loop exit
PB: predicated region body
PF: predicated region fallthrough
CT: control target
= control target key end

     0   :  { %s593_s13 = smov 64   ;;  %v594_v3 = vmov 0.0   ;;  %s595_s14 = smov 32   ;;  %vm46_vm0 = vcmask 523264   ;;  %vm55_vm1 = vcmask 261120   ;;  %vm60_vm5 = vcmask 195584   ;;  %s757_s0 = inlined_call_operand.vmem [shape: f32[8,256], index: 0, kind: input, shape index: {}]   ;;  %s758_s1 = inlined_call_operand.vmem [shape: f32[16,24], index: 1, kind: input, shape index: {}]   ;;  %s759_s2 = inlined_call_operand.vmem [shape: f32[16,1], index: 2, kind: input, shape index: {}]   ;;  %s760_s3 = inlined_call_operand.vmem [shape: f32[16,1], index: 3, kind: input, shape index: {}]   ;;  %s761_s4 = inlined_call_operand.vmem [shape: f32[16,48], index: 4, kind: input, shape index: {}]   ;;  %s762_s7 = inlined_call_operand.vmem [shape: f32[16,8], index: 7, kind: input, shape index: {}]   ;;  %s763_s5 = inlined_call_operand.vmem [shape: f32[16,1], index: 5, kind: input, shape index: {}]   ;;  %s764_s8 = inlined_call_operand.vmem [shape: f32[16,1], index: 8, kind: input, shape index: {}]   ;;  %s765_s6 = inlined_call_operand.vmem [shape: f32[16,1], index: 6, kind: input, shape index: {}]   ;;  %s766_s9 = inlined_call_operand.vmem [shape: f32[16,256], index: 9, kind: output, shape index: {}]  }
   0x1   :  { %v32_v0 = vld [vmem:[%s757_s0] sm:$0xff]  ;;  %v33_v1 = vld [vmem:[%s757_s0 + $0x8] sm:$0xff]  ;;  %131 = vmatprep.mubr.f32.mxu0 %v594_v3  ;;  %323 = vmatprep.mubr.f32.mxu1 %v594_v3  ;;  %vm658_vm2 = vmneg %vm46_vm0  ;;  %v596_v30 = vmov 0   ;;  %vm252_vm8 = vcmask 392192   ;;  %vm416_vm9 = vcmask 64512  }
   0x2   :  { %v553_v2 = vpack.i.bf16 %v33_v1, %v32_v0  ;;  %vm663_vm3 = vmneg %vm55_vm1  ;;  %v34_v16 = vld [vmem:[%s758_s1] sm:$0xff]  ;;  %v35_v17 = vld [vmem:[%s758_s1 + $0x8] sm:$0xff]  ;;  %563 = vset.pattern.permute.xlu1 %v596_v30  ;;  %584 = vset.pattern.permute.xlu0 %v596_v30 }
   0x3   :  { %vm533_vm4 = vmpackc.low %vm663_vm3, %vm658_vm2  ;;  %v36_v45 = vld [vmem:[%s759_s2] sm:$0xff]  ;;  %v37_v48 = vld [vmem:[%s759_s2 + $0x8] sm:$0xff] }
   0x4   :  { %554 = vrot.lane.b32.xlu0 %v553_v2, %s593_s13  ;;  %v38_v52 = vld [vmem:[%s760_s3] sm:$0xff]  ;;  %v39_v55 = vld [vmem:[%s760_s3 + $0x8] sm:$0xff]  ;;  %vm538_vm6 = vmpackc.low %vm658_vm2, %vm658_vm2 }
   0x5   :  { %vm543_vm7 = vmpackc.low %vm663_vm3, %vm663_vm3  ;;  %v210_v8 = vld [vmem:[%s761_s4] sm:$0xff] }
   0x6   :  { %v402_v11 = vld [vmem:[%s762_s7] sm:$0xff] }
   0x8   :  { %559 = vrot.lane.b32.xlu0 %v553_v2, %s595_s14 }
  0x76   :  { %v555_v4 = vpop.permute.xlu0 %554 }
  0x77   :  { %v557_v5 = vunpack.i.h.bf16 %v555_v4  ;;  %v556_v6 = vunpack.i.l.bf16 %v555_v4 }
  0x79   :  { %v47_v12 = vsel %vm46_vm0, %v556_v6, %v557_v5 }
  0x7a   :  { %v560_v7 = vpop.permute.xlu0 %559 }
  0x7b   :  { %v562_v9 = vunpack.i.h.bf16 %v560_v7  ;;  %v561_v10 = vunpack.i.l.bf16 %v560_v7 }
  0x7d   :  { %v56_v13 = vsel %vm55_vm1, %v561_v10, %v562_v9  ;;  %v532_v15 = vpack.c.bf16 %v561_v10, %v556_v6 }
  0x7e   :  { %v530_v14 = vpack.c.bf16 %v56_v13, %v47_v12 }
  0x80   :  { %531 = vmatprep.subr.bf16.mxu0 %v530_v14 }
  0x81   :  { %534 = vmatpush1.bf16.msk.msra.mxu0 %vm533_vm4, %v532_v15 }
  0x82   :  { %71 = vmatprep.subr.mxu0 %v33_v1 }
  0x85   :  { %72 = vmatpush1.msra.mxu0 %v32_v0 }
  0x86   :  { %516 = vmatmul.mubr.msk.f32.vlgmr.msra.gmra.mrb[0].mxu0 %vm60_vm5, %v34_v16  ;;  %423 = vmatprep.subr.mxu0 %v33_v1 }
  0x87   :  { %137 = vmatprep.mubr.f32.mxu0 %v594_v3  ;;  %424 = vmatpush1.msra.mxu0 %v32_v0 }
  0x8a   :  { %517 = vmatmul.mubr.msk.f32.gmra.mrb[2].mxu0 %vm60_vm5, %v35_v17 }
  0x8b   :  { %487 = vmatprep.mubr.f32.mxu0 %v594_v3 }
  0x8e   :  { %528 = vmatmul.mubr.msk.f32.vlgmr.msra.gmra.mrb[4].mxu0 %vm416_vm9, %v402_v11 }
  0x8f   :  { %493 = vmatprep.mubr.f32.mxu0 %v594_v3 }
 0x159   :  { %v133_v18 = vpop.f32.mrb[0].mxu0 }
 0x15a   :  { %v135_v19 = vpop.f32.mrb[1].mxu0  ;;  %v150_v20 = vmul.f32 %v133_v18, %v133_v18 }
 0x15b   :  { %v144_v21 = vadd.f32 %v135_v19, %v133_v18  ;;  %v151_v22 = vmul.f32 %v135_v19, %v135_v19 }
 0x15d   :  { %145 = vadd.xlane.f32.xlu1 %v144_v21  ;;  %v139_v23 = vpop.f32.mrb[2].mxu0  ;;  %v154_v24 = vadd.f32 %v151_v22, %v150_v20 }
 0x15e   :  { %v141_v25 = vpop.f32.mrb[3].mxu0  ;;  %v152_v26 = vmul.f32 %v139_v23, %v139_v23 }
 0x15f   :  { %155 = vadd.xlane.f32.xlu0 %v154_v24  ;;  %v147_v27 = vadd.f32 %v141_v25, %v139_v23  ;;  %v153_v28 = vmul.f32 %v141_v25, %v141_v25 }
 0x161   :  { %148 = vadd.xlane.f32.xlu1 %v147_v27  ;;  %v157_v29 = vadd.f32 %v153_v28, %v152_v26 }
 0x165   :  { %158 = vadd.xlane.f32.xlu1 %v157_v29 }
 0x1ea   :  { %v146_v31 = vpop.xlane.xlu1 %145 }
 0x1eb   :  { %v160_v32 = vmul.f32 0.00390625, %v146_v31 }
 0x1ec   :  { %v156_v33 = vpop.xlane.xlu0 %155 }
 0x1ed   :  { %v164_v34 = vmul.f32 %v160_v32, %v160_v32  ;;  %v162_v35 = vmul.f32 0.00390625, %v156_v33 }
 0x1ee   :  { %v149_v36 = vpop.xlane.xlu1 %148 }
 0x1ef   :  { %v166_v37 = vsub.f32 %v162_v35, %v164_v34  ;;  %v161_v38 = vmul.f32 0.00390625, %v149_v36  ;;  %v211_v36 = vld [vmem:[%s761_s4 + $0x8] sm:$0xff] }
 0x1f1   :  { %v168_v39 = vadd.f32 1e-05, %v166_v37  ;;  %v165_v41 = vmul.f32 %v161_v38, %v161_v38  ;;  %v403_v37 = vld [vmem:[%s762_s7 + $0x8] sm:$0xff] }
 0x1f2   :  { %v159_v40 = vpop.xlane.xlu1 %158  ;;  %529 = vmatmul.mubr.msk.f32.gmra.mrb[6].mxu0 %vm416_vm9, %v403_v37 }
 0x1f3   :  { %585 = vrsqrt.f32 %v168_v39  ;;  %v163_v42 = vmul.f32 0.00390625, %v159_v40 }
 0x1f5   :  { %v167_v43 = vsub.f32 %v163_v42, %v165_v41 }
 0x1f7   :  { %v169_v44 = vadd.f32 1e-05, %v167_v43 }
 0x1f9   :  { %587 = vrsqrt.f32 %v169_v44 }
 0x1fd   :  { %v586_v46 = vpop.eup %585 }
 0x1fe   :  { %v172_v47 = vmul.f32 %v586_v46, %v36_v45 }
 0x200   :  { %180 = vperm.xlu1 %563, %v172_v47   ;;  %v174_v51 = vmul.f32 %v172_v47, %v160_v32 }
 0x202   :  { %v176_v53 = vsub.f32 %v38_v52, %v174_v51 }
 0x203   :  { %v588_v49 = vpop.eup %587 }
 0x204   :  { %v173_v50 = vmul.f32 %v588_v49, %v37_v48 }
 0x206   :  { %185 = vperm.xlu1 %563, %v173_v50   ;;  %v175_v54 = vmul.f32 %v173_v50, %v161_v38 }
 0x208   :  { %v177_v56 = vsub.f32 %v39_v55, %v175_v54 }
 0x20a   :  { %194 = vperm.xlu1 %563, %v176_v53  }
 0x20e   :  { %199 = vperm.xlu1 %563, %v177_v56  }
 0x27f   :  { %v181_v57 = vpop.permute.xlu1 %180 }
 0x280   :  { %v188_v59 = vmul.f32 %v181_v57, %v133_v18  ;;  %v189_v60 = vmul.f32 %v181_v57, %v135_v19 }
 0x285   :  { %v186_v58 = vpop.permute.xlu1 %185 }
 0x286   :  { %v190_v0 = vmul.f32 %v186_v58, %v139_v23  ;;  %v191_v1 = vmul.f32 %v186_v58, %v141_v25 }
 0x289   :  { %v195_v61 = vpop.permute.xlu1 %194 }
 0x28a   :  { %v202_v62 = vadd.f32 %v195_v61, %v188_v59  ;;  %v203_v63 = vadd.f32 %v195_v61, %v189_v60 }
 0x28c   :  { %v206_v2 = vmax.f32 %v202_v62, 0.0  ;;  %v207_v4 = vmax.f32 %v203_v63, 0.0  ;;  %v212_v63 = vld [vmem:[%s763_s5] sm:$0xff] }
 0x28d   :  { %v200_v5 = vpop.permute.xlu1 %199 }
 0x28e   :  { %v204_v6 = vadd.f32 %v200_v5, %v190_v0  ;;  %v205_v7 = vadd.f32 %v200_v5, %v191_v1  ;;  %v569_v9 = vpack.i.bf16 %v207_v4, %v206_v2 }
 0x290   :  { %v208_v10 = vmax.f32 %v204_v6, 0.0  ;;  %v209_v12 = vmax.f32 %v205_v7, 0.0  ;;  %570 = vrot.lane.b32.xlu1 %v569_v9, %s595_s14  ;;  %565 = vrot.lane.b32.xlu0 %v569_v9, %s593_s13  ;;  %v404_v6 = vld [vmem:[%s764_s8] sm:$0xff] }
 0x292   :  { %v574_v13 = vpack.i.bf16 %v209_v12, %v208_v10  ;;  %v545_v14 = vpack.c.bf16 %v209_v12, %v207_v4  ;;  %v547_v15 = vpack.c.bf16 %v208_v10, %v206_v2  ;;  %v213_v2 = vld [vmem:[%s763_s5 + $0x8] sm:$0xff]  ;;  %v489_v4 = vpop.f32.mrb[4].mxu0  ;;  %v214_v12 = vld [vmem:[%s765_s6] sm:$0xff] }
 0x293   :  { %v491_v7 = vpop.f32.mrb[5].mxu0 }
 0x294   :  { %575 = vrot.lane.b32.xlu1 %v574_v13, %s593_s13 }
 0x298   :  { %580 = vrot.lane.b32.xlu1 %v574_v13, %s595_s14 }
 0x302   :  { %v566_v16 = vpop.permute.xlu0 %565  ;;  %v571_v17 = vpop.permute.xlu1 %570 }
 0x303   :  { %v568_v18 = vunpack.i.h.bf16 %v566_v16  ;;  %v567_v19 = vunpack.i.l.bf16 %v566_v16  ;;  %v573_v23 = vunpack.i.h.bf16 %v571_v17  ;;  %v572_v24 = vunpack.i.l.bf16 %v571_v17  ;;  %v405_v17 = vld [vmem:[%s764_s8 + $0x8] sm:$0xff] }
 0x305   :  { %v228_v25 = vsel %vm46_vm0, %v567_v19, %v568_v18  ;;  %v244_v32 = vsel %vm55_vm1, %v572_v24, %v573_v23  ;;  %v495_v18 = vpop.f32.mrb[6].mxu0 }
 0x306   :  { %v576_v20 = vpop.permute.xlu1 %575 }
 0x307   :  { %v578_v21 = vunpack.i.h.bf16 %v576_v20  ;;  %v577_v22 = vunpack.i.l.bf16 %v576_v20 }
 0x309   :  { %v229_v26 = vsel %vm46_vm0, %v577_v22, %v578_v21  ;;  %v537_v29 = vpack.c.bf16 %v577_v22, %v567_v19  ;;  %v497_v19 = vpop.f32.mrb[7].mxu0 }
 0x30a   :  { %v581_v27 = vpop.permute.xlu1 %580  ;;  %v535_v28 = vpack.c.bf16 %v229_v26, %v228_v25 }
 0x30b   :  { %v583_v30 = vunpack.i.h.bf16 %v581_v27  ;;  %v582_v31 = vunpack.i.l.bf16 %v581_v27 }
 0x30c   :  { %536 = vmatprep.subr.bf16.mxu1 %v535_v28 }
 0x30d   :  { %539 = vmatpush1.bf16.msk.msra.mxu1 %vm538_vm6, %v537_v29  ;;  %v245_v33 = vsel %vm55_vm1, %v582_v31, %v583_v30  ;;  %v542_v35 = vpack.c.bf16 %v582_v31, %v572_v24 }
 0x30e   :  { %v540_v34 = vpack.c.bf16 %v245_v33, %v244_v32 }
 0x310   :  { %541 = vmatprep.subr.bf16.mxu1 %v540_v34 }
 0x311   :  { %544 = vmatpush1.bf16.msk.msra.mxu1 %vm543_vm7, %v542_v35 }
 0x312   :  { %546 = vmatprep.subr.bf16.mxu1 %v545_v14 }
 0x315   :  { %548 = vmatpush1.bf16.msra.mxu1 %v547_v15  ;;  %v215_v15 = vld [vmem:[%s765_s6 + $0x8] sm:$0xff] }
 0x318   :  { %526 = vmatmul.mubr.msk.f32.vlgmr.msra.gmra.mrb[0].mxu1 %vm252_vm8, %v210_v8 }
 0x319   :  { %329 = vmatprep.mubr.f32.mxu1 %v594_v3 }
 0x31c   :  { %527 = vmatmul.mubr.msk.f32.gmra.mrb[2].mxu1 %vm252_vm8, %v211_v36 }
 0x3eb   :  { %v325_v38 = vpop.f32.mrb[0].mxu1 }
 0x3ec   :  { %v327_v39 = vpop.f32.mrb[1].mxu1  ;;  %v342_v40 = vmul.f32 %v325_v38, %v325_v38 }
 0x3ed   :  { %v336_v41 = vadd.f32 %v327_v39, %v325_v38  ;;  %v343_v42 = vmul.f32 %v327_v39, %v327_v39 }
 0x3ef   :  { %337 = vadd.xlane.f32.xlu1 %v336_v41  ;;  %v721_v43 = vpop.f32.mrb[2].mxu1  ;;  %v346_v44 = vadd.f32 %v343_v42, %v342_v40 }
 0x3f0   :  { %v333_v45 = vpop.f32.mrb[3].mxu1  ;;  %v344_v46 = vmul.f32 %v721_v43, %v721_v43 }
 0x3f1   :  { %v345_v47 = vmul.f32 %v333_v45, %v333_v45  ;;  %v339_v3 = vadd.f32 %v333_v45, %v721_v43 }
 0x3f3   :  { %347 = vadd.xlane.f32.xlu1 %v346_v44  ;;  %340 = vadd.xlane.f32.xlu0 %v339_v3  ;;  %v349_v48 = vadd.f32 %v345_v47, %v344_v46 }
 0x3f7   :  { %350 = vadd.xlane.f32.xlu0 %v349_v48 }
 0x47c   :  { %v338_v49 = vpop.xlane.xlu1 %337 }
 0x47d   :  { %v352_v50 = vmul.f32 0.00390625, %v338_v49 }
 0x47f   :  { %v356_v53 = vmul.f32 %v352_v50, %v352_v50 }
 0x480   :  { %v348_v51 = vpop.xlane.xlu1 %347  ;;  %v341_v52 = vpop.xlane.xlu0 %340 }
 0x481   :  { %v354_v54 = vmul.f32 0.00390625, %v348_v51  ;;  %v353_v55 = vmul.f32 0.00390625, %v341_v52 }
 0x483   :  { %v358_v56 = vsub.f32 %v354_v54, %v356_v53  ;;  %v357_v57 = vmul.f32 %v353_v55, %v353_v55 }
 0x484   :  { %v351_v58 = vpop.xlane.xlu0 %350 }
 0x485   :  { %v360_v59 = vadd.f32 1e-05, %v358_v56  ;;  %v355_v60 = vmul.f32 0.00390625, %v351_v58 }
 0x487   :  { %589 = vrsqrt.f32 %v360_v59  ;;  %v359_v61 = vsub.f32 %v355_v60, %v357_v57 }
 0x489   :  { %v361_v62 = vadd.f32 1e-05, %v359_v61 }
 0x48b   :  { %591 = vrsqrt.f32 %v361_v62 }
 0x491   :  { %v590_v0 = vpop.eup %589 }
 0x492   :  { %v364_v1 = vmul.f32 %v590_v0, %v212_v63 }
 0x494   :  { %372 = vperm.xlu1 %563, %v364_v1   ;;  %v366_v10 = vmul.f32 %v364_v1, %v352_v50 }
 0x495   :  { %v592_v5 = vpop.eup %591 }
 0x496   :  { %v365_v9 = vmul.f32 %v592_v5, %v213_v2  ;;  %v368_v13 = vsub.f32 %v214_v12, %v366_v10 }
 0x498   :  { %408 = vperm.xlu1 %563, %v404_v6   ;;  %377 = vperm.xlu0 %584, %v365_v9   ;;  %v367_v14 = vmul.f32 %v365_v9, %v353_v55 }
 0x49a   :  { %v369_v16 = vsub.f32 %v215_v15, %v367_v14 }
 0x49c   :  { %386 = vperm.xlu1 %563, %v368_v13  }
 0x4a0   :  { %391 = vperm.xlu1 %563, %v369_v16  }
 0x4a4   :  { %413 = vperm.xlu1 %563, %v405_v17  }
 0x513   :  { %v373_v20 = vpop.permute.xlu1 %372 }
 0x514   :  { %v380_v22 = vmul.f32 %v373_v20, %v325_v38  ;;  %v381_v23 = vmul.f32 %v373_v20, %v327_v39 }
 0x517   :  { %v409_v21 = vpop.permute.xlu1 %408  ;;  %v378_v24 = vpop.permute.xlu0 %377 }
 0x518   :  { %v490_v28 = vadd.f32 %v489_v4, %v409_v21  ;;  %v492_v29 = vadd.f32 %v491_v7, %v409_v21  ;;  %v382_v30 = vmul.f32 %v378_v24, %v721_v43  ;;  %v383_v31 = vmul.f32 %v378_v24, %v333_v45 }
 0x51b   :  { %v387_v25 = vpop.permute.xlu1 %386 }
 0x51c   :  { %v394_v26 = vadd.f32 %v387_v25, %v380_v22  ;;  %v395_v27 = vadd.f32 %v387_v25, %v381_v23 }
 0x51e   :  { %v398_v32 = vmax.f32 %v394_v26, 0.0  ;;  %v399_v33 = vmax.f32 %v395_v27, 0.0 }
 0x51f   :  { %v392_v34 = vpop.permute.xlu1 %391 }
 0x520   :  { %v500_v35 = vadd.f32 %v490_v28, %v398_v32  ;;  %v501_v8 = vadd.f32 %v492_v29, %v399_v33  ;;  %v396_v36 = vadd.f32 %v392_v34, %v382_v30  ;;  %v397_v11 = vadd.f32 %v392_v34, %v383_v31 }
 0x522   :  { %504 = vst [vmem:[%s766_s9] sm:$0xff] %v500_v35  ;;  %505 = vst [vmem:[%s766_s9 + $0x8] sm:$0xff] %v501_v8  ;;  %v400_v38 = vmax.f32 %v396_v36, 0.0  ;;  %v401_v39 = vmax.f32 %v397_v11, 0.0 }
 0x523   :  { %v414_v37 = vpop.permute.xlu1 %413 }
 0x524   :  { %v496_v40 = vadd.f32 %v495_v18, %v414_v37  ;;  %v498_v41 = vadd.f32 %v497_v19, %v414_v37 }
 0x526   :  { %v502_v42 = vadd.f32 %v496_v40, %v400_v38  ;;  %v503_v43 = vadd.f32 %v498_v41, %v401_v39 }
 0x528   :  { %506 = vst [vmem:[%s766_s9 + $0x10] sm:$0xff] %v502_v42  ;;  %507 = vst [vmem:[%s766_s9 + $0x18] sm:$0xff] %v503_v43 }

// kernel: tcn_forward.2
= control target key start
LH: loop header
LB: loop body
LE: loop exit
PB: predicated region body
PF: predicated region fallthrough
CT: control target
= control target key end

     0   :  { %v598_v2 = vmov 0.0   ;;  %s599_s13 = smov 16   ;;  %s600_s14 = smov 124   ;;  %vm50_vm0 = vcmask 130048   ;;  %vm60_vm1 = vcmask 1043456   ;;  %vm42_vm2 = vcmask 261120   ;;  %s732_s0 = inlined_call_operand.vmem [shape: f32[4,256], index: 0, kind: input, shape index: {}]   ;;  %s733_s1 = inlined_call_operand.vmem [shape: f32[8,12], index: 1, kind: input, shape index: {}]   ;;  %s734_s2 = inlined_call_operand.vmem [shape: f32[8,1], index: 2, kind: input, shape index: {}]   ;;  %s735_s3 = inlined_call_operand.vmem [shape: f32[8,1], index: 3, kind: input, shape index: {}]   ;;  %s736_s4 = inlined_call_operand.vmem [shape: f32[8,24], index: 4, kind: input, shape index: {}]   ;;  %s737_s7 = inlined_call_operand.vmem [shape: f32[8,4], index: 7, kind: input, shape index: {}]   ;;  %s738_s5 = inlined_call_operand.vmem [shape: f32[8,1], index: 5, kind: input, shape index: {}]   ;;  %s739_s6 = inlined_call_operand.vmem [shape: f32[8,1], index: 6, kind: input, shape index: {}]   ;;  %s740_s8 = inlined_call_operand.vmem [shape: f32[8,1], index: 8, kind: input, shape index: {}]   ;;  %s741_s9 = inlined_call_operand.vmem [shape: f32[8,256], index: 9, kind: output, shape index: {}]  }
   0x1   :  { %v657_v0 = vld [vmem:[%s732_s0] sm:$0xff]  ;;  %130 = vmatprep.mubr.f32.mxu0 %v598_v2  ;;  %418 = vmatprep.mubr.f32.mxu1 %v598_v2  ;;  %s601_s0 = smov 32   ;;  %vm57_vm3 = vcmask 31744   ;;  %v603_v20 = vmov 0   ;;  %vm558_vm4 = vmneg %vm42_vm2  ;;  %vm350_vm7 = vcmask 195584  }
   0x2   :  { %v33_v1 = vld [vmem:[%s733_s1] sm:$0xff]  ;;  %46 = vrot.lane.b32.xlu0 %v657_v0, %s599_s13  ;;  %v668_v3 = vcombine.high %v657_v0, %v657_v0  ;;  %s602_s1 = smov 120   ;;  %582 = vset.pattern.permute.xlu1 %v603_v20  ;;  %vm560_vm5 = vmneg %vm50_vm0 }
   0x3   :  { %55 = vrot.lane.b32.xlu1 %v33_v1, %s600_s14  ;;  %581 = vset.pattern.permute.xlu0 %v603_v20  ;;  %v34_v28 = vld [vmem:[%s734_s2] sm:$0xff]  ;;  %vm569_vm6 = vmpackc.low %vm560_vm5, %vm558_vm4 }
   0x4   :  { %v35_v31 = vld [vmem:[%s735_s3] sm:$0xff] }
   0x5   :  { %v329_v53 = vld [vmem:[%s736_s4] sm:$0xff] }
   0x6   :  { %48 = vrot.lane.b32.xlu0 %v668_v3, %s599_s13  ;;  %v458_v54 = vld [vmem:[%s737_s7] sm:$0xff] }
   0x7   :  { %38 = vrot.lane.b32.xlu1 %v657_v0, %s601_s0 }
   0xa   :  { %40 = vrot.lane.b32.xlu0 %v668_v3, %s601_s0 }
   0xb   :  { %215 = vrot.lane.b32.xlu1 %v33_v1, %s602_s1 }
  0x74   :  { %v47_v4 = vpop.permute.xlu0 %46 }
  0x75   :  { %v56_v5 = vpop.permute.xlu1 %55  ;;  %v53_v9 = vsel %vm50_vm0, 0.0, %v47_v4 }
  0x78   :  { %v49_v6 = vpop.permute.xlu0 %48 }
  0x79   :  { %v51_v7 = vsel %vm50_vm0, %v47_v4, %v49_v6  ;;  %v39_v8 = vpop.permute.xlu1 %38  ;;  %v330_v4 = vld [vmem:[%s738_s5] sm:$0xff] }
  0x7a   :  { %549 = vmatprep.subr.msk.mxu0 %vm60_vm1, %v51_v7  ;;  %v45_v10 = vsel %vm42_vm2, 0.0, %v39_v8  ;;  %v331_v7 = vld [vmem:[%s739_s6] sm:$0xff] }
  0x7b   :  { %550 = vmatpush1.msk.msra.mxu0 %vm60_vm1, %v53_v9 }
  0x7c   :  { %551 = vmatmul.mubr.msk.f32.vlgmr.msra.gmra.mrb[0].mxu0 %vm57_vm3, %v56_v5  ;;  %v41_v11 = vpop.permute.xlu0 %40 }
  0x7d   :  { %v43_v12 = vsel %vm42_vm2, %v39_v8, %v41_v11  ;;  %208 = vmatprep.mubr.f32.mxu0 %v598_v2  ;;  %v216_v13 = vpop.permute.xlu1 %215 }
  0x7e   :  { %552 = vmatprep.subr.msk.mxu0 %vm60_vm1, %v43_v12 }
  0x7f   :  { %553 = vmatpush1.msk.msra.mxu0 %vm60_vm1, %v45_v10  ;;  %v459_v10 = vld [vmem:[%s740_s8] sm:$0xff] }
  0x80   :  { %555 = vmatprep.subr.msk.mxu0 %vm60_vm1, %v668_v3 }
  0x84   :  { %554 = vmatmul.mubr.msk.f32.vlgmr.msra.gmra.mrb[0].mxu0 %vm57_vm3, %v33_v1 }
  0x85   :  { %556 = vmatpush1.msk.msra.mxu0 %vm60_vm1, %v657_v0  ;;  %287 = vmatprep.mubr.f32.mxu0 %v598_v2 }
  0x8c   :  { %557 = vmatmul.mubr.msk.f32.vlgmr.msra.gmra.mrb[0].mxu0 %vm57_vm3, %v216_v13 }
 0x15f   :  { %v289_v14 = vpop.f32.mrb[0].mxu0 }
 0x160   :  { %v291_v15 = vpop.f32.mrb[1].mxu0  ;;  %v299_v16 = vmul.f32 %v289_v14, %v289_v14 }
 0x161   :  { %v300_v17 = vmul.f32 %v291_v15, %v291_v15  ;;  %v296_v18 = vadd.f32 %v291_v15, %v289_v14 }
 0x163   :  { %297 = vadd.xlane.f32.xlu0 %v296_v18  ;;  %v301_v19 = vadd.f32 %v300_v17, %v299_v16 }
 0x165   :  { %302 = vadd.xlane.f32.xlu1 %v301_v19 }
 0x1f0   :  { %v298_v21 = vpop.xlane.xlu0 %297 }
 0x1f1   :  { %v304_v22 = vmul.f32 0.00390625, %v298_v21 }
 0x1f2   :  { %v303_v23 = vpop.xlane.xlu1 %302 }
 0x1f3   :  { %v306_v24 = vmul.f32 %v304_v22, %v304_v22  ;;  %v305_v25 = vmul.f32 0.00390625, %v303_v23 }
 0x1f5   :  { %v307_v26 = vsub.f32 %v305_v25, %v306_v24 }
 0x1f7   :  { %v308_v27 = vadd.f32 1e-05, %v307_v26 }
 0x1f9   :  { %594 = vrsqrt.f32 %v308_v27 }
 0x203   :  { %v595_v29 = vpop.eup %594 }
 0x204   :  { %v310_v30 = vmul.f32 %v595_v29, %v34_v28 }
 0x206   :  { %315 = vperm.xlu0 %581, %v310_v30   ;;  %v311_v32 = vmul.f32 %v310_v30, %v304_v22 }
 0x208   :  { %v312_v33 = vsub.f32 %v35_v31, %v311_v32 }
 0x20a   :  { %322 = vperm.xlu1 %582, %v312_v33  }
 0x285   :  { %v316_v34 = vpop.permute.xlu0 %315 }
 0x286   :  { %v318_v35 = vmul.f32 %v316_v34, %v289_v14  ;;  %v319_v36 = vmul.f32 %v316_v34, %v291_v15 }
 0x289   :  { %v323_v37 = vpop.permute.xlu1 %322 }
 0x28a   :  { %v325_v38 = vadd.f32 %v323_v37, %v318_v35  ;;  %v326_v39 = vadd.f32 %v323_v37, %v319_v36 }
 0x28c   :  { %v327_v40 = vmax.f32 %v325_v38, 0.0  ;;  %v328_v41 = vmax.f32 %v326_v39, 0.0 }
 0x28e   :  { %v583_v42 = vpack.i.bf16 %v328_v41, %v327_v40 }
 0x290   :  { %584 = vrot.lane.b32.xlu1 %v583_v42, %s601_s0 }
 0x294   :  { %589 = vrot.lane.b32.xlu1 %v583_v42, %s599_s13 }
 0x302   :  { %v585_v43 = vpop.permute.xlu1 %584 }
 0x303   :  { %v587_v44 = vunpack.i.h.bf16 %v585_v43  ;;  %v586_v45 = vunpack.i.l.bf16 %v585_v43 }
 0x305   :  { %v338_v49 = vsel %vm42_vm2, %v586_v45, %v587_v44 }
 0x306   :  { %v590_v46 = vpop.permute.xlu1 %589 }
 0x307   :  { %v592_v47 = vunpack.i.h.bf16 %v590_v46  ;;  %v591_v48 = vunpack.i.l.bf16 %v590_v46 }
 0x309   :  { %v346_v50 = vsel %vm50_vm0, %v591_v48, %v592_v47  ;;  %v568_v52 = vpack.c.bf16 %v591_v48, %v586_v45 }
 0x30a   :  { %v566_v51 = vpack.c.bf16 %v346_v50, %v338_v49 }
 0x30c   :  { %567 = vmatprep.subr.bf16.mxu1 %v566_v51 }
 0x30d   :  { %570 = vmatpush1.bf16.msk.msra.mxu1 %vm569_vm6, %v568_v52 }
 0x30e   :  { %358 = vmatprep.subr.mxu1 %v328_v41 }
 0x311   :  { %359 = vmatpush1.msra.mxu1 %v327_v40 }
 0x312   :  { %562 = vmatmul.mubr.msk.f32.vlgmr.msra.gmra.mrb[0].mxu1 %vm350_vm7, %v329_v53  ;;  %563 = vmatprep.subr.msk.mxu1 %vm60_vm1, %v668_v3 }
 0x313   :  { %564 = vmatpush1.msk.msra.mxu1 %vm60_vm1, %v657_v0  ;;  %532 = vmatprep.mubr.f32.mxu1 %v598_v2 }
 0x316   :  { %565 = vmatmul.mubr.msk.f32.vlgmr.msra.gmra.mrb[2].mxu1 %vm57_vm3, %v458_v54 }
 0x3e5   :  { %v420_v55 = vpop.f32.mrb[0].mxu1 }
 0x3e6   :  { %v422_v56 = vpop.f32.mrb[1].mxu1  ;;  %v428_v57 = vmul.f32 %v420_v55, %v420_v55 }
 0x3e7   :  { %v425_v58 = vadd.f32 %v422_v56, %v420_v55  ;;  %v429_v59 = vmul.f32 %v422_v56, %v422_v56 }
 0x3e9   :  { %426 = vadd.xlane.f32.xlu1 %v425_v58  ;;  %v430_v60 = vadd.f32 %v429_v59, %v428_v57  ;;  %v534_v9 = vpop.f32.mrb[2].mxu1 }
 0x3ea   :  { %v536_v11 = vpop.f32.mrb[3].mxu1 }
 0x3eb   :  { %431 = vadd.xlane.f32.xlu0 %v430_v60 }
 0x476   :  { %v427_v61 = vpop.xlane.xlu1 %426 }
 0x477   :  { %v433_v62 = vmul.f32 0.00390625, %v427_v61 }
 0x478   :  { %v432_v63 = vpop.xlane.xlu0 %431 }
 0x479   :  { %v435_v0 = vmul.f32 %v433_v62, %v433_v62  ;;  %v434_v1 = vmul.f32 0.00390625, %v432_v63 }
 0x47b   :  { %v436_v2 = vsub.f32 %v434_v1, %v435_v0 }
 0x47d   :  { %v437_v3 = vadd.f32 1e-05, %v436_v2 }
 0x47f   :  { %596 = vrsqrt.f32 %v437_v3 }
 0x489   :  { %v597_v5 = vpop.eup %596 }
 0x48a   :  { %v439_v6 = vmul.f32 %v597_v5, %v330_v4 }
 0x48c   :  { %444 = vperm.xlu1 %582, %v439_v6   ;;  %v440_v8 = vmul.f32 %v439_v6, %v433_v62 }
 0x48e   :  { %v441_v12 = vsub.f32 %v331_v7, %v440_v8 }
 0x490   :  { %462 = vperm.xlu1 %582, %v459_v10   ;;  %451 = vperm.xlu0 %581, %v441_v12  }
 0x50b   :  { %v445_v13 = vpop.permute.xlu1 %444 }
 0x50c   :  { %v447_v14 = vmul.f32 %v445_v13, %v420_v55  ;;  %v448_v15 = vmul.f32 %v445_v13, %v422_v56 }
 0x50f   :  { %v463_v16 = vpop.permute.xlu1 %462  ;;  %v452_v17 = vpop.permute.xlu0 %451 }
 0x510   :  { %v454_v18 = vadd.f32 %v452_v17, %v447_v14  ;;  %v455_v19 = vadd.f32 %v452_v17, %v448_v15  ;;  %v535_v20 = vadd.f32 %v534_v9, %v463_v16  ;;  %v537_v21 = vadd.f32 %v536_v11, %v463_v16 }
 0x512   :  { %v456_v22 = vmax.f32 %v454_v18, 0.0  ;;  %v457_v23 = vmax.f32 %v455_v19, 0.0 }
 0x514   :  { %v539_v24 = vadd.f32 %v535_v20, %v456_v22  ;;  %v540_v25 = vadd.f32 %v537_v21, %v457_v23 }
 0x516   :  { %v541_v26 = vmax.f32 %v539_v24, 0.0  ;;  %v542_v27 = vmax.f32 %v540_v25, 0.0 }
 0x518   :  { %543 = vst [vmem:[%s741_s9] sm:$0xff] %v541_v26  ;;  %544 = vst [vmem:[%s741_s9 + $0x8] sm:$0xff] %v542_v27 }

</bundles_post_ra>
